<compile_context>
chip_gen: v7x
topology: tpu7x:2x2x1
jax: 0.10.0
libtpu: 0.0.40
codegen_flags: <defaults>
</compile_context>

<pallas_src>
import functools

import jax
import jax.numpy as jnp
from jax import lax
from jax.experimental import pallas as pl
from jax.experimental.pallas import tpu as pltpu

C_OUT = 16
KSIZE = 5
PAD = 2
TAPS = 36          # deduplicated (r, c) taps of the 6x6 pooled receptive footprint
KROWS = 40         # padded to a sublane (8) multiple; rows 36..39 carry zero weight


def _round_up(x, m):
    return (x + m - 1) // m * m


def _conv_relu_pool_kernel(planes_ref, w_ref, b_ref, o_ref, p_scr, *, wb, m_pad):
    # planes_ref: (1, 4, L)   4 parity planes (py,px) of the zero-padded input, each
    #                         flattened with b_tile images concatenated along width:
    #                         flat index = u*wb + b*wp + v for plane element (u, b, v).
    # w_ref:      (64, 40)    quadrant-scattered weights (q*16+co, r*6+c).
    # b_ref:      (16, 1)
    # o_ref:      (1, 16, m_pad)   lane m = oi*wb + b*wp + oj (junk lanes sliced later).
    # p_scr:      (40, m_pad) VMEM scratch: deduplicated patch matrix.
    #
    # Build the patch matrix 8 sublane-rows at a time (one dense (8, m_pad) store per
    # group instead of 8 single-sublane masked stores).
    for g in range(KROWS // 8):
        rows = []
        for j in range(8):
            k = g * 8 + j
            if k < TAPS:
                r, c = k // 6, k % 6
                p = (r % 2) * 2 + (c % 2)            # parity plane holding (r, c)
                shift = (r // 2) * wb + (c // 2)     # static flat offset in that plane
            else:
                # zero-weight padding row: duplicate tap (0, 0); its weight column is 0.
                p, shift = 0, 0
            rows.append(planes_ref[0, p:p + 1, shift:shift + m_pad])
        p_scr[g * 8:(g + 1) * 8, :] = jnp.concatenate(rows, axis=0)

    # One MXU matmul: (64, 40) @ (40, m_pad) -> (64, m_pad), f32 accumulation.
    y = jnp.dot(w_ref[...], p_scr[...], preferred_element_type=jnp.float32)

    # 2x2 maxpool == elementwise max over the four quadrant slabs (16-row, tile-aligned
    # sublane slices).  bias + ReLU commute with the max (relu(x+b) monotone in x).
    m = jnp.maximum(jnp.maximum(y[0:16], y[16:32]),
                    jnp.maximum(y[32:48], y[48:64]))
    o_ref[0] = jnp.maximum(m + b_ref[...], 0.0).astype(o_ref.dtype)


def cnn_client_forward(x_nchw, conv_w, conv_b, *, b_tile=None):
    """x: (N,1,H,W) f32, conv_w: (16,1,5,5), conv_b: (16,) -> (N,16,H//2,W//2)."""
    n, cin, h, w = x_nchw.shape
    assert cin == 1 and h % 2 == 0 and w % 2 == 0
    ho, wo = h // 2, w // 2
    hp, wp = ho + 2, wo + 2                  # parity-plane dims of the padded input

    # Batch-tile so each grid step has ~8K output lanes (amortizes per-step overhead),
    # but keep at least 2 grid steps when n >= 2 so both v7x TensorCores are used.
    lanes_per_image = ho * wp
    if b_tile is None:
        b_tile = max(1, 8192 // lanes_per_image)
        if n >= 2:
            b_tile = min(b_tile, -(-n // 2))
        b_tile = max(1, min(b_tile, n))
    n_pad = _round_up(n, b_tile)
    n_tiles = n_pad // b_tile

    wb = b_tile * wp                          # lane width of one pooled-output row group
    m = ho * wb                               # real (incl. junk-col) output lanes / tile
    m_pad = _round_up(m, 128)                 # lane-dense output width
    l = _round_up(max(hp * wb, m_pad + 2 * wb + 2), 128)   # padded flat plane length

    # ---- wrapper-side layout plumbing: one pad + one transpose + flatten + tail pad ----
    xp = jnp.pad(x_nchw[:, 0].astype(jnp.float32),
                 ((0, n_pad - n), (PAD, PAD), (PAD, PAD)))       # (n_pad, H+4, W+4)
    xq = xp.reshape(n_tiles, b_tile, hp, 2, wp, 2)               # (t, b, u, py, v, px)
    xq = xq.transpose(0, 3, 5, 2, 1, 4)                          # (t, py, px, u, b, v)
    planes = xq.reshape(n_tiles, 4, hp * wb)                     # flat: u*wb + b*wp + v
    planes = jnp.pad(planes, ((0, 0), (0, 0), (0, l - hp * wb)))

    # Quadrant-scattered weight: W64[q*16+co, r*6+c] = conv_w[co, r-qi, c-qj] or 0.
    wk = conv_w.reshape(C_OUT, KSIZE, KSIZE).astype(jnp.float32)
    blocks = []
    for qi in range(2):
        for qj in range(2):
            wq = jnp.pad(wk, ((0, 0), (qi, 1 - qi), (qj, 1 - qj)))   # (16, 6, 6)
            blocks.append(wq.reshape(C_OUT, TAPS))
    w64 = jnp.pad(jnp.concatenate(blocks, axis=0), ((0, 0), (0, KROWS - TAPS)))
    b_mat = conv_b.reshape(C_OUT, 1).astype(jnp.float32)

    # Explicit scoped-VMEM limit: double-buffered input/output blocks + scratch + params.
    block_bytes = 4 * (2 * 4 * l + 2 * C_OUT * m_pad + KROWS * m_pad
                       + 2 * (4 * C_OUT * KROWS + C_OUT))
    vmem_limit = int(min(48 << 20, max(32 << 20, 2 * block_bytes)))

    kernel = functools.partial(_conv_relu_pool_kernel, wb=wb, m_pad=m_pad)
    out = pl.pallas_call(
        kernel,
        out_shape=jax.ShapeDtypeStruct((n_tiles, C_OUT, m_pad), jnp.float32),
        grid_spec=pltpu.PrefetchScalarGridSpec(
            num_scalar_prefetch=0,
            grid=(n_tiles,),
            in_specs=[
                pl.BlockSpec((1, 4, l), lambda t: (t, 0, 0)),
                pl.BlockSpec((4 * C_OUT, KROWS), lambda t: (0, 0)),
                pl.BlockSpec((C_OUT, 1), lambda t: (0, 0)),
            ],
            out_specs=pl.BlockSpec((1, C_OUT, m_pad), lambda t: (t, 0, 0)),
            scratch_shapes=[pltpu.VMEM((KROWS, m_pad), jnp.float32)],
        ),
        compiler_params=pltpu.CompilerParams(
            dimension_semantics=("parallel",),
            vmem_limit_bytes=vmem_limit),
    )(planes, w64, b_mat)

    # Unpack lanes: m = oi*wb + b*wp + oj; drop junk columns (oj >= wo) and batch pad.
    out = out[:, :, :m].reshape(n_tiles, C_OUT, ho, b_tile, wp)[..., :wo]
    out = out.transpose(0, 3, 1, 2, 4).reshape(n_pad, C_OUT, ho, wo)
    return out[:n]


def _reference_forward(x_nchw, conv_w, conv_b):
    y = lax.conv_general_dilated(
        x_nchw, conv_w, window_strides=(1, 1), padding=[(PAD, PAD), (PAD, PAD)],
        dimension_numbers=("NCHW", "OIHW", "NCHW"))
    y = y + conv_b.reshape(1, C_OUT, 1, 1)
    y = jnp.maximum(y, 0.0)
    n, c, h, w = y.shape
    return y.reshape(n, c, h // 2, 2, w // 2, 2).max(axis=(3, 5))


if __name__ == "__main__":
    key = jax.random.PRNGKey(0)
    kx, kw, kb = jax.random.split(key, 3)

    # small MNIST-like input consistent with Conv2d(in_channels=1, ...)
    x = jax.random.normal(kx, (2, 1, 16, 16), dtype=jnp.float32)
    # deterministic synthetic parameters (shapes from nn.Conv2d(1, 16, 5))
    conv_w = (jax.random.normal(kw, (C_OUT, 1, KSIZE, KSIZE), dtype=jnp.float32) * 0.1)
    conv_b = (jax.random.normal(kb, (C_OUT,), dtype=jnp.float32) * 0.1)

    out = cnn_client_forward(x, conv_w, conv_b)
    out = jax.block_until_ready(out)

    ref = _reference_forward(x, conv_w, conv_b)
    assert out.shape == (2, C_OUT, 8, 8), out.shape
    assert jnp.allclose(out, ref, atol=1e-4, rtol=1e-4), float(jnp.abs(out - ref).max())

    print("KERNEL_OK")
</pallas_src>

<mosaic_0001>
module attributes {stable_mosaic.version = 11 : i64} {
  func.func @_conv_relu_pool_kernel(%arg0: i32, %arg1: memref<1x4x256xf32, #tpu.memory_space<vmem>>, %arg2: memref<64x40xf32, #tpu.memory_space<vmem>>, %arg3: memref<16x1xf32, #tpu.memory_space<vmem>>, %arg4: memref<1x16x128xf32, #tpu.memory_space<vmem>>, %arg5: memref<40x128xf32, #tpu.memory_space<vmem>>) attributes {dimension_semantics = [#tpu.dimension_semantics<parallel>], iteration_bounds = array<i64: 2>, scalar_prefetch = 0 : i64, scratch_operands = 1 : i64, tpu.core_type = #tpu.core_type<tc>, window_params = [{transform_indices = @transform_0, window_bounds = array<i64: 1, 4, 256>}, {pipeline_mode = #tpu.pipeline_mode<synchronous>, transform_indices = @transform_1, window_bounds = array<i64: 64, 40>}, {pipeline_mode = #tpu.pipeline_mode<synchronous>, transform_indices = @transform_2, window_bounds = array<i64: 16, 1>}, {transform_indices = @transform_3, window_bounds = array<i64: 1, 16, 128>}]} {
    %c0 = arith.constant 0 : index
    %c0_0 = arith.constant 0 : index
    %c0_1 = arith.constant 0 : index
    %0 = vector.load %arg1[%c0, %c0_0, %c0_1] : memref<1x4x256xf32, #tpu.memory_space<vmem>>, vector<1x1x128xf32>
    %1 = vector.shape_cast %0 : vector<1x1x128xf32> to vector<1x128xf32>
    %c0_2 = arith.constant 0 : index
    %c1 = arith.constant 1 : index
    %c0_3 = arith.constant 0 : index
    %2 = vector.load %arg1[%c0_2, %c1, %c0_3] : memref<1x4x256xf32, #tpu.memory_space<vmem>>, vector<1x1x128xf32>
    %3 = vector.shape_cast %2 : vector<1x1x128xf32> to vector<1x128xf32>
    %c0_4 = arith.constant 0 : index
    %c0_5 = arith.constant 0 : index
    %c1_6 = arith.constant 1 : index
    %4 = vector.load %arg1[%c0_4, %c0_5, %c1_6] : memref<1x4x256xf32, #tpu.memory_space<vmem>>, vector<1x1x128xf32>
    %5 = vector.shape_cast %4 : vector<1x1x128xf32> to vector<1x128xf32>
    %c0_7 = arith.constant 0 : index
    %c1_8 = arith.constant 1 : index
    %c1_9 = arith.constant 1 : index
    %6 = vector.load %arg1[%c0_7, %c1_8, %c1_9] : memref<1x4x256xf32, #tpu.memory_space<vmem>>, vector<1x1x128xf32>
    %7 = vector.shape_cast %6 : vector<1x1x128xf32> to vector<1x128xf32>
    %c0_10 = arith.constant 0 : index
    %c0_11 = arith.constant 0 : index
    %c2 = arith.constant 2 : index
    %8 = vector.load %arg1[%c0_10, %c0_11, %c2] : memref<1x4x256xf32, #tpu.memory_space<vmem>>, vector<1x1x128xf32>
    %9 = vector.shape_cast %8 : vector<1x1x128xf32> to vector<1x128xf32>
    %c0_12 = arith.constant 0 : index
    %c1_13 = arith.constant 1 : index
    %c2_14 = arith.constant 2 : index
    %10 = vector.load %arg1[%c0_12, %c1_13, %c2_14] : memref<1x4x256xf32, #tpu.memory_space<vmem>>, vector<1x1x128xf32>
    %11 = vector.shape_cast %10 : vector<1x1x128xf32> to vector<1x128xf32>
    %c0_15 = arith.constant 0 : index
    %c2_16 = arith.constant 2 : index
    %c0_17 = arith.constant 0 : index
    %12 = vector.load %arg1[%c0_15, %c2_16, %c0_17] : memref<1x4x256xf32, #tpu.memory_space<vmem>>, vector<1x1x128xf32>
    %13 = vector.shape_cast %12 : vector<1x1x128xf32> to vector<1x128xf32>
    %c0_18 = arith.constant 0 : index
    %c3 = arith.constant 3 : index
    %c0_19 = arith.constant 0 : index
    %14 = vector.load %arg1[%c0_18, %c3, %c0_19] : memref<1x4x256xf32, #tpu.memory_space<vmem>>, vector<1x1x128xf32>
    %15 = vector.shape_cast %14 : vector<1x1x128xf32> to vector<1x128xf32>
    %16 = tpu.concatenate %1, %3, %5, %7, %9, %11, %13, %15 in 0 : vector<1x128xf32>, vector<1x128xf32>, vector<1x128xf32>, vector<1x128xf32>, vector<1x128xf32>, vector<1x128xf32>, vector<1x128xf32>, vector<1x128xf32> -> vector<8x128xf32>
    %c0_20 = arith.constant 0 : index
    %c0_21 = arith.constant 0 : index
    %17 = vector.load %arg5[%c0_20, %c0_21] : memref<40x128xf32, #tpu.memory_space<vmem>>, vector<8x128xf32>
    tpu.vector_store %arg5[%c0_20, %c0_21], %16 {strides = array<i32>} : memref<40x128xf32, #tpu.memory_space<vmem>>, vector<8x128xf32>,
    %c0_22 = arith.constant 0 : index
    %c2_23 = arith.constant 2 : index
    %c1_24 = arith.constant 1 : index
    %18 = vector.load %arg1[%c0_22, %c2_23, %c1_24] : memref<1x4x256xf32, #tpu.memory_space<vmem>>, vector<1x1x128xf32>
    %19 = vector.shape_cast %18 : vector<1x1x128xf32> to vector<1x128xf32>
    %c0_25 = arith.constant 0 : index
    %c3_26 = arith.constant 3 : index
    %c1_27 = arith.constant 1 : index
    %20 = vector.load %arg1[%c0_25, %c3_26, %c1_27] : memref<1x4x256xf32, #tpu.memory_space<vmem>>, vector<1x1x128xf32>
    %21 = vector.shape_cast %20 : vector<1x1x128xf32> to vector<1x128xf32>
    %c0_28 = arith.constant 0 : index
    %c2_29 = arith.constant 2 : index
    %c2_30 = arith.constant 2 : index
    %22 = vector.load %arg1[%c0_28, %c2_29, %c2_30] : memref<1x4x256xf32, #tpu.memory_space<vmem>>, vector<1x1x128xf32>
    %23 = vector.shape_cast %22 : vector<1x1x128xf32> to vector<1x128xf32>
    %c0_31 = arith.constant 0 : index
    %c3_32 = arith.constant 3 : index
    %c2_33 = arith.constant 2 : index
    %24 = vector.load %arg1[%c0_31, %c3_32, %c2_33] : memref<1x4x256xf32, #tpu.memory_space<vmem>>, vector<1x1x128xf32>
    %25 = vector.shape_cast %24 : vector<1x1x128xf32> to vector<1x128xf32>
    %c0_34 = arith.constant 0 : index
    %c0_35 = arith.constant 0 : index
    %c10 = arith.constant 10 : index
    %26 = vector.load %arg1[%c0_34, %c0_35, %c10] : memref<1x4x256xf32, #tpu.memory_space<vmem>>, vector<1x1x128xf32>
    %27 = vector.shape_cast %26 : vector<1x1x128xf32> to vector<1x128xf32>
    %c0_36 = arith.constant 0 : index
    %c1_37 = arith.constant 1 : index
    %c10_38 = arith.constant 10 : index
    %28 = vector.load %arg1[%c0_36, %c1_37, %c10_38] : memref<1x4x256xf32, #tpu.memory_space<vmem>>, vector<1x1x128xf32>
    %29 = vector.shape_cast %28 : vector<1x1x128xf32> to vector<1x128xf32>
    %c0_39 = arith.constant 0 : index
    %c0_40 = arith.constant 0 : index
    %c11 = arith.constant 11 : index
    %30 = vector.load %arg1[%c0_39, %c0_40, %c11] : memref<1x4x256xf32, #tpu.memory_space<vmem>>, vector<1x1x128xf32>
    %31 = vector.shape_cast %30 : vector<1x1x128xf32> to vector<1x128xf32>
    %c0_41 = arith.constant 0 : index
    %c1_42 = arith.constant 1 : index
    %c11_43 = arith.constant 11 : index
    %32 = vector.load %arg1[%c0_41, %c1_42, %c11_43] : memref<1x4x256xf32, #tpu.memory_space<vmem>>, vector<1x1x128xf32>
    %33 = vector.shape_cast %32 : vector<1x1x128xf32> to vector<1x128xf32>
    %34 = tpu.concatenate %19, %21, %23, %25, %27, %29, %31, %33 in 0 : vector<1x128xf32>, vector<1x128xf32>, vector<1x128xf32>, vector<1x128xf32>, vector<1x128xf32>, vector<1x128xf32>, vector<1x128xf32>, vector<1x128xf32> -> vector<8x128xf32>
    %c8 = arith.constant 8 : index
    %c0_44 = arith.constant 0 : index
    %35 = vector.load %arg5[%c8, %c0_44] : memref<40x128xf32, #tpu.memory_space<vmem>>, vector<8x128xf32>
    tpu.vector_store %arg5[%c8, %c0_44], %34 {strides = array<i32>} : memref<40x128xf32, #tpu.memory_space<vmem>>, vector<8x128xf32>,
    %c0_45 = arith.constant 0 : index
    %c0_46 = arith.constant 0 : index
    %c12 = arith.constant 12 : index
    %36 = vector.load %arg1[%c0_45, %c0_46, %c12] : memref<1x4x256xf32, #tpu.memory_space<vmem>>, vector<1x1x128xf32>
    %37 = vector.shape_cast %36 : vector<1x1x128xf32> to vector<1x128xf32>
    %c0_47 = arith.constant 0 : index
    %c1_48 = arith.constant 1 : index
    %c12_49 = arith.constant 12 : index
    %38 = vector.load %arg1[%c0_47, %c1_48, %c12_49] : memref<1x4x256xf32, #tpu.memory_space<vmem>>, vector<1x1x128xf32>
    %39 = vector.shape_cast %38 : vector<1x1x128xf32> to vector<1x128xf32>
    %c0_50 = arith.constant 0 : index
    %c2_51 = arith.constant 2 : index
    %c10_52 = arith.constant 10 : index
    %40 = vector.load %arg1[%c0_50, %c2_51, %c10_52] : memref<1x4x256xf32, #tpu.memory_space<vmem>>, vector<1x1x128xf32>
    %41 = vector.shape_cast %40 : vector<1x1x128xf32> to vector<1x128xf32>
    %c0_53 = arith.constant 0 : index
    %c3_54 = arith.constant 3 : index
    %c10_55 = arith.constant 10 : index
    %42 = vector.load %arg1[%c0_53, %c3_54, %c10_55] : memref<1x4x256xf32, #tpu.memory_space<vmem>>, vector<1x1x128xf32>
    %43 = vector.shape_cast %42 : vector<1x1x128xf32> to vector<1x128xf32>
    %c0_56 = arith.constant 0 : index
    %c2_57 = arith.constant 2 : index
    %c11_58 = arith.constant 11 : index
    %44 = vector.load %arg1[%c0_56, %c2_57, %c11_58] : memref<1x4x256xf32, #tpu.memory_space<vmem>>, vector<1x1x128xf32>
    %45 = vector.shape_cast %44 : vector<1x1x128xf32> to vector<1x128xf32>
    %c0_59 = arith.constant 0 : index
    %c3_60 = arith.constant 3 : index
    %c11_61 = arith.constant 11 : index
    %46 = vector.load %arg1[%c0_59, %c3_60, %c11_61] : memref<1x4x256xf32, #tpu.memory_space<vmem>>, vector<1x1x128xf32>
    %47 = vector.shape_cast %46 : vector<1x1x128xf32> to vector<1x128xf32>
    %c0_62 = arith.constant 0 : index
    %c2_63 = arith.constant 2 : index
    %c12_64 = arith.constant 12 : index
    %48 = vector.load %arg1[%c0_62, %c2_63, %c12_64] : memref<1x4x256xf32, #tpu.memory_space<vmem>>, vector<1x1x128xf32>
    %49 = vector.shape_cast %48 : vector<1x1x128xf32> to vector<1x128xf32>
    %c0_65 = arith.constant 0 : index
    %c3_66 = arith.constant 3 : index
    %c12_67 = arith.constant 12 : index
    %50 = vector.load %arg1[%c0_65, %c3_66, %c12_67] : memref<1x4x256xf32, #tpu.memory_space<vmem>>, vector<1x1x128xf32>
    %51 = vector.shape_cast %50 : vector<1x1x128xf32> to vector<1x128xf32>
    %52 = tpu.concatenate %37, %39, %41, %43, %45, %47, %49, %51 in 0 : vector<1x128xf32>, vector<1x128xf32>, vector<1x128xf32>, vector<1x128xf32>, vector<1x128xf32>, vector<1x128xf32>, vector<1x128xf32>, vector<1x128xf32> -> vector<8x128xf32>
    %c16 = arith.constant 16 : index
    %c0_68 = arith.constant 0 : index
    %53 = vector.load %arg5[%c16, %c0_68] : memref<40x128xf32, #tpu.memory_space<vmem>>, vector<8x128xf32>
    tpu.vector_store %arg5[%c16, %c0_68], %52 {strides = array<i32>} : memref<40x128xf32, #tpu.memory_space<vmem>>, vector<8x128xf32>,
    %c0_69 = arith.constant 0 : index
    %c0_70 = arith.constant 0 : index
    %c20 = arith.constant 20 : index
    %54 = vector.load %arg1[%c0_69, %c0_70, %c20] : memref<1x4x256xf32, #tpu.memory_space<vmem>>, vector<1x1x128xf32>
    %55 = vector.shape_cast %54 : vector<1x1x128xf32> to vector<1x128xf32>
    %c0_71 = arith.constant 0 : index
    %c1_72 = arith.constant 1 : index
    %c20_73 = arith.constant 20 : index
    %56 = vector.load %arg1[%c0_71, %c1_72, %c20_73] : memref<1x4x256xf32, #tpu.memory_space<vmem>>, vector<1x1x128xf32>
    %57 = vector.shape_cast %56 : vector<1x1x128xf32> to vector<1x128xf32>
    %c0_74 = arith.constant 0 : index
    %c0_75 = arith.constant 0 : index
    %c21 = arith.constant 21 : index
    %58 = vector.load %arg1[%c0_74, %c0_75, %c21] : memref<1x4x256xf32, #tpu.memory_space<vmem>>, vector<1x1x128xf32>
    %59 = vector.shape_cast %58 : vector<1x1x128xf32> to vector<1x128xf32>
    %c0_76 = arith.constant 0 : index
    %c1_77 = arith.constant 1 : index
    %c21_78 = arith.constant 21 : index
    %60 = vector.load %arg1[%c0_76, %c1_77, %c21_78] : memref<1x4x256xf32, #tpu.memory_space<vmem>>, vector<1x1x128xf32>
    %61 = vector.shape_cast %60 : vector<1x1x128xf32> to vector<1x128xf32>
    %c0_79 = arith.constant 0 : index
    %c0_80 = arith.constant 0 : index
    %c22 = arith.constant 22 : index
    %62 = vector.load %arg1[%c0_79, %c0_80, %c22] : memref<1x4x256xf32, #tpu.memory_space<vmem>>, vector<1x1x128xf32>
    %63 = vector.shape_cast %62 : vector<1x1x128xf32> to vector<1x128xf32>
    %c0_81 = arith.constant 0 : index
    %c1_82 = arith.constant 1 : index
    %c22_83 = arith.constant 22 : index
    %64 = vector.load %arg1[%c0_81, %c1_82, %c22_83] : memref<1x4x256xf32, #tpu.memory_space<vmem>>, vector<1x1x128xf32>
    %65 = vector.shape_cast %64 : vector<1x1x128xf32> to vector<1x128xf32>
    %c0_84 = arith.constant 0 : index
    %c2_85 = arith.constant 2 : index
    %c20_86 = arith.constant 20 : index
    %66 = vector.load %arg1[%c0_84, %c2_85, %c20_86] : memref<1x4x256xf32, #tpu.memory_space<vmem>>, vector<1x1x128xf32>
    %67 = vector.shape_cast %66 : vector<1x1x128xf32> to vector<1x128xf32>
    %c0_87 = arith.constant 0 : index
    %c3_88 = arith.constant 3 : index
    %c20_89 = arith.constant 20 : index
    %68 = vector.load %arg1[%c0_87, %c3_88, %c20_89] : memref<1x4x256xf32, #tpu.memory_space<vmem>>, vector<1x1x128xf32>
    %69 = vector.shape_cast %68 : vector<1x1x128xf32> to vector<1x128xf32>
    %70 = tpu.concatenate %55, %57, %59, %61, %63, %65, %67, %69 in 0 : vector<1x128xf32>, vector<1x128xf32>, vector<1x128xf32>, vector<1x128xf32>, vector<1x128xf32>, vector<1x128xf32>, vector<1x128xf32>, vector<1x128xf32> -> vector<8x128xf32>
    %c24 = arith.constant 24 : index
    %c0_90 = arith.constant 0 : index
    %71 = vector.load %arg5[%c24, %c0_90] : memref<40x128xf32, #tpu.memory_space<vmem>>, vector<8x128xf32>
    tpu.vector_store %arg5[%c24, %c0_90], %70 {strides = array<i32>} : memref<40x128xf32, #tpu.memory_space<vmem>>, vector<8x128xf32>,
    %c0_91 = arith.constant 0 : index
    %c2_92 = arith.constant 2 : index
    %c21_93 = arith.constant 21 : index
    %72 = vector.load %arg1[%c0_91, %c2_92, %c21_93] : memref<1x4x256xf32, #tpu.memory_space<vmem>>, vector<1x1x128xf32>
    %73 = vector.shape_cast %72 : vector<1x1x128xf32> to vector<1x128xf32>
    %c0_94 = arith.constant 0 : index
    %c3_95 = arith.constant 3 : index
    %c21_96 = arith.constant 21 : index
    %74 = vector.load %arg1[%c0_94, %c3_95, %c21_96] : memref<1x4x256xf32, #tpu.memory_space<vmem>>, vector<1x1x128xf32>
    %75 = vector.shape_cast %74 : vector<1x1x128xf32> to vector<1x128xf32>
    %c0_97 = arith.constant 0 : index
    %c2_98 = arith.constant 2 : index
    %c22_99 = arith.constant 22 : index
    %76 = vector.load %arg1[%c0_97, %c2_98, %c22_99] : memref<1x4x256xf32, #tpu.memory_space<vmem>>, vector<1x1x128xf32>
    %77 = vector.shape_cast %76 : vector<1x1x128xf32> to vector<1x128xf32>
    %c0_100 = arith.constant 0 : index
    %c3_101 = arith.constant 3 : index
    %c22_102 = arith.constant 22 : index
    %78 = vector.load %arg1[%c0_100, %c3_101, %c22_102] : memref<1x4x256xf32, #tpu.memory_space<vmem>>, vector<1x1x128xf32>
    %79 = vector.shape_cast %78 : vector<1x1x128xf32> to vector<1x128xf32>
    %c0_103 = arith.constant 0 : index
    %c0_104 = arith.constant 0 : index
    %c0_105 = arith.constant 0 : index
    %80 = vector.load %arg1[%c0_103, %c0_104, %c0_105] : memref<1x4x256xf32, #tpu.memory_space<vmem>>, vector<1x1x128xf32>
    %81 = vector.shape_cast %80 : vector<1x1x128xf32> to vector<1x128xf32>
    %c0_106 = arith.constant 0 : index
    %c0_107 = arith.constant 0 : index
    %c0_108 = arith.constant 0 : index
    %82 = vector.load %arg1[%c0_106, %c0_107, %c0_108] : memref<1x4x256xf32, #tpu.memory_space<vmem>>, vector<1x1x128xf32>
    %83 = vector.shape_cast %82 : vector<1x1x128xf32> to vector<1x128xf32>
    %c0_109 = arith.constant 0 : index
    %c0_110 = arith.constant 0 : index
    %c0_111 = arith.constant 0 : index
    %84 = vector.load %arg1[%c0_109, %c0_110, %c0_111] : memref<1x4x256xf32, #tpu.memory_space<vmem>>, vector<1x1x128xf32>
    %85 = vector.shape_cast %84 : vector<1x1x128xf32> to vector<1x128xf32>
    %c0_112 = arith.constant 0 : index
    %c0_113 = arith.constant 0 : index
    %c0_114 = arith.constant 0 : index
    %86 = vector.load %arg1[%c0_112, %c0_113, %c0_114] : memref<1x4x256xf32, #tpu.memory_space<vmem>>, vector<1x1x128xf32>
    %87 = vector.shape_cast %86 : vector<1x1x128xf32> to vector<1x128xf32>
    %88 = tpu.concatenate %73, %75, %77, %79, %81, %83, %85, %87 in 0 : vector<1x128xf32>, vector<1x128xf32>, vector<1x128xf32>, vector<1x128xf32>, vector<1x128xf32>, vector<1x128xf32>, vector<1x128xf32>, vector<1x128xf32> -> vector<8x128xf32>
    %c32 = arith.constant 32 : index
    %c0_115 = arith.constant 0 : index
    %89 = vector.load %arg5[%c32, %c0_115] : memref<40x128xf32, #tpu.memory_space<vmem>>, vector<8x128xf32>
    tpu.vector_store %arg5[%c32, %c0_115], %88 {strides = array<i32>} : memref<40x128xf32, #tpu.memory_space<vmem>>, vector<8x128xf32>,
    %c0_116 = arith.constant 0 : index
    %c0_117 = arith.constant 0 : index
    %90 = vector.load %arg2[%c0_116, %c0_117] : memref<64x40xf32, #tpu.memory_space<vmem>>, vector<64x40xf32>
    %c0_118 = arith.constant 0 : index
    %c0_119 = arith.constant 0 : index
    %91 = vector.load %arg5[%c0_118, %c0_119] : memref<40x128xf32, #tpu.memory_space<vmem>>, vector<40x128xf32>
    %cst = arith.constant dense<0.000000e+00> : vector<64x128xf32>
    %92 = tpu.matmul %90, %91, %cst {dimension_numbers = #tpu.dot_dimension_numbers<[1], [0], [0], [1], [0, 0, 1, 1], [], []>} : vector<64x40xf32>, vector<40x128xf32>, vector<64x128xf32> -> vector<64x128xf32>
    %93 = vector.extract_strided_slice %92 {offsets = [0, 0], sizes = [16, 128], strides = [1, 1]} : vector<64x128xf32> to vector<16x128xf32>
    %94 = vector.extract_strided_slice %92 {offsets = [16, 0], sizes = [16, 128], strides = [1, 1]} : vector<64x128xf32> to vector<16x128xf32>
    %95 = arith.maximumf %93, %94 : vector<16x128xf32>
    %96 = vector.extract_strided_slice %92 {offsets = [32, 0], sizes = [16, 128], strides = [1, 1]} : vector<64x128xf32> to vector<16x128xf32>
    %97 = vector.extract_strided_slice %92 {offsets = [48, 0], sizes = [16, 128], strides = [1, 1]} : vector<64x128xf32> to vector<16x128xf32>
    %98 = arith.maximumf %96, %97 : vector<16x128xf32>
    %99 = arith.maximumf %95, %98 : vector<16x128xf32>
    %c0_120 = arith.constant 0 : index
    %c0_121 = arith.constant 0 : index
    %100 = vector.load %arg3[%c0_120, %c0_121] : memref<16x1xf32, #tpu.memory_space<vmem>>, vector<16x1xf32>
    %101 = vector.broadcast %100 : vector<16x1xf32> to vector<16x128xf32>
    %102 = arith.addf %99, %101 : vector<16x128xf32>
    %cst_122 = arith.constant 0.000000e+00 : f32
    %103 = vector.broadcast %cst_122 : f32 to vector<16x128xf32>
    %104 = arith.maximumf %102, %103 : vector<16x128xf32>
    %c0_123 = arith.constant 0 : index
    %c0_124 = arith.constant 0 : index
    %c0_125 = arith.constant 0 : index
    %105 = vector.load %arg4[%c0_123, %c0_124, %c0_125] : memref<1x16x128xf32, #tpu.memory_space<vmem>>, vector<1x16x128xf32>
    %106 = vector.shape_cast %105 : vector<1x16x128xf32> to vector<16x128xf32>
    %107 = vector.shape_cast %104 : vector<16x128xf32> to vector<1x16x128xf32>
    tpu.vector_store %arg4[%c0_123, %c0_124, %c0_125], %107 {strides = array<i32>} : memref<1x16x128xf32, #tpu.memory_space<vmem>>, vector<1x16x128xf32>,
    return
  }
  func.func @transform_0(%arg0: i32) -> (i32, i32, i32) {
    %c0_i32 = arith.constant 0 : i32
    %c0_i32_0 = arith.constant 0 : i32
    %c0_i32_1 = arith.constant 0 : i32
    return %arg0, %c0_i32, %c0_i32_0 : i32, i32, i32
  }
  func.func @transform_1(%arg0: i32) -> (i32, i32) {
    %c0_i32 = arith.constant 0 : i32
    %c0_i32_0 = arith.constant 0 : i32
    %c0_i32_1 = arith.constant 0 : i32
    return %c0_i32, %c0_i32_0 : i32, i32
  }
  func.func @transform_2(%arg0: i32) -> (i32, i32) {
    %c0_i32 = arith.constant 0 : i32
    %c0_i32_0 = arith.constant 0 : i32
    %c0_i32_1 = arith.constant 0 : i32
    return %c0_i32, %c0_i32_0 : i32, i32
  }
  func.func @transform_3(%arg0: i32) -> (i32, i32, i32) {
    %c0_i32 = arith.constant 0 : i32
    %c0_i32_0 = arith.constant 0 : i32
    %c0_i32_1 = arith.constant 0 : i32
    return %arg0, %c0_i32, %c0_i32_0 : i32, i32, i32
  }
}

</mosaic_0001>

<bundles_post_ra>
// kernel: tpu_custom_call.1
= control target key start
LH: loop header
LB: loop body
LE: loop exit
PB: predicated region body
PF: predicated region fallthrough
CT: control target
= control target key end

     0   :  { %8 = vsyncpa [#allocation4], 0  ;;  %s1567_s0 = inlined_call_operand.vmem [shape: f32[2,4,256], index: 0, kind: input, shape index: {}]   ;;  %s1568_s1 = inlined_call_operand.vmem [shape: f32[64,40], index: 1, kind: input, shape index: {}]   ;;  %s1569_s2 = inlined_call_operand.vmem [shape: f32[16,1], index: 2, kind: input, shape index: {}]   ;;  %s1570_s3 = inlined_call_operand.hbm [shape: f32[2,16,128], index: 3, kind: output, shape index: {}]  }
   0x1   :  { %10 = vsyncpa [#allocation4 + $0x1], 0  ;;  %s1211_s12 = smov 0   ;;  %s1213_s13 = smov 0  }
   0x2   :  { %s1215_s14 = smov 0   ;;  %s1217_s15 = smov 0  }
   0x3 LB: > { %s1232_s16 = sadd.s32 4294967295, %s1175_s15   ;;  %s879_s17 = sadd.s32 4294967294, %s1175_s15   ;;  %s1175_s15 = sphi %s1217_s15, %s1576_s15   ;;  %s1171_s14 = sphi %s1215_s14, %s1575_s14   ;;  %s1167_s13 = sphi %s1213_s13, %s1574_s13   ;;  %s1163_s12 = sphi %s1211_s12, %s1573_s12  }
   0x4   : > { %s1236_s18 = sadd.s32 1, %s1175_s15   ;;  %s91_s19 = sadd.s32 1, %s1171_s14 }
   0x5   : > { %s88_s20 = ssub.s32 %s1175_s15, %s1236_s18  ;;  %p101_p0 = scmp.ne.s32.totalorder %s1171_s14, %s1167_s13 }
   0x6   : > { %p89_p1 = scmp.eq.s32.totalorder %s88_s20, 0  ;;  %p102_p2 = scmp.eq.s32.totalorder %s1232_s16, 1 }
   0x7   : > { %p107_p3 = scmp.ne.s32.totalorder %s1167_s13, %s1163_s12  ;;  %p108_p4 = scmp.eq.s32.totalorder %s879_s17, 1 }
   0x8   : > { %s1247_s21 = scalar_select %p89_p1, %s1171_s14, %s91_s19  }
   0x9   : > { %p1249_p5 = por %p102_p2, %p101_p0  ;;  %p1253_p6 = por %p108_p4, %p107_p3 }
   0xa   : > { %p882_p7 = scmp.ge.s32.totalorder %s1175_s15, 1  ;;  %p140_p8 = scmp.lt.s32.totalorder %s1175_s15, 3 }
   0xc   : > { %p141_p9 = pnand %p882_p7, %p140_p8 }
   0xd   : > { %p164_p10 = scmp.lt.s32.totalorder (!%p141_p9), %s1232_s16, 1  ;;  %v182_v0 = vlaneseq (!%p141_p9)  ;;  %vm237_vm0 = vcmask (!%p141_p9), 1040384   ;;  %s1177_s29 = smov (!%p141_p9), 119   ;;  %vm194_vm1 = vcmask (!%p141_p9), 1039360   ;;  %vm239_vm2 = vcmask (!%p141_p9), 1041408  }
   0xe   : > { %144 = sbr.rel (%p141_p9) target bundleno = 543 (0x21f), region = 32  ;;  %s1178_s30 = smov (!%p141_p9), 127   ;;  %vm241_vm3 = vcmask (!%p141_p9), 1042432   ;;  %vm305_vm4 = vcmask (!%p141_p9), 973824   ;;  %vm243_vm5 = vcmask (!%p141_p9), 1043456   ;;  %vm245_vm6 = vcmask (!%p141_p9), 1044480  }
   0xf   : > { %v183_v1 = vshrl.u32 (!%p141_p9), %v182_v0, 7  ;;  %s1179_s4 = smov (!%p141_p9), 2   ;;  %s1180_s5 = smov (!%p141_p9), 118   ;;  %vm329_vm7 = vcmask (!%p141_p9), 965632   ;;  %vm247_vm8 = vcmask (!%p141_p9), 1045504   ;;  %vm249_vm9 = vcmask (!%p141_p9), 1046528  }
  0x10   : > { %s1181_s6 = smov (!%p141_p9), 126   ;;  %s1182_s7 = smov (!%p141_p9), 1   ;;  %vm402_vm10 = vcmask (!%p141_p9), 15360   ;;  %vm216_vm11 = vcmask (!%p141_p9), 1031168   ;;  %vm426_vm12 = vcmask (!%p141_p9), 7168   ;;  %vm649_vm13 = vcmask (!%p141_p9), 326656  }
  0x11   : > { %v1261_v2 = vsub.s32 (!%p141_p9), 0, %v183_v1  ;;  %v1263_v3 = vsub.s32 (!%p141_p9), 4, %v183_v1  ;;  %s1183_s8 = smov (!%p141_p9), 21   ;;  %s1184_s19 = smov (!%p141_p9), 116   ;;  %vm461_vm14 = vcmask (!%p141_p9), 949248   ;;  %vm561_vm15 = vcmask (!%p141_p9), 883712  }
  0x12   : > { %s1185_s20 = smov (!%p141_p9), 108   ;;  %s904_s27 = sshll.u32 (!%p141_p9), %s1232_s16, 8 }
  0x15   : > { %s165_s24 = scalar_select %p164_p10, %s1232_s16, 1 }
  0x16   : > { %s1188_s16 = smov [#allocation3]  }
  0x17   : > { %s903_s25 = sshll.u32 %s165_s24, 3  ;;  %s1187_s24 = smov 107  }
  0x18   : > { %s1268_s28 = scalar_lea.vmem %s1567_s0, %s903_s25 }
  0x19   : > { %v254_v4 = vld [vmem:[%s1268_s28] sm:$0x11]  ;;  %v252_v5 = vld [vmem:[%s1268_s28 + $0x2] sm:$0x11]  ;;  %v255_v6 = vld [vmem:[%s1268_s28 + $0x1] sm:$0x11] }
  0x1a   : > { %v296_v7 = vrot.slane %v254_v4, %v1261_v2  ;;  %v300_v8 = vrot.slane %v254_v4, %v1263_v3  ;;  %v260_v9 = vrot.slane %v252_v5, %v1261_v2  ;;  %v264_v10 = vrot.slane %v252_v5, %v1263_v3  ;;  %v253_v11 = vld [vmem:[%s1268_s28 + $0x3] sm:$0x11]  ;;  %v365_v12 = vld [vmem:[%s1268_s28 + $0x2] sm:$0x11]  ;;  %v465_v24 = vld [vmem:[%s1268_s28] sm:$0x11] }
  0x1b   : > { %v313_v13 = vrot.slane %v255_v6, %v1261_v2  ;;  %v317_v14 = vrot.slane %v255_v6, %v1263_v3  ;;  %v271_v15 = vrot.slane %v253_v11, %v1261_v2  ;;  %v275_v16 = vrot.slane %v253_v11, %v1263_v3  ;;  %v466_v25 = vld [vmem:[%s1268_s28 + $0x1] sm:$0x11]  ;;  %v363_v26 = vld [vmem:[%s1268_s28] sm:$0x11]  ;;  %v366_v32 = vld [vmem:[%s1268_s28 + $0x3] sm:$0x11] }
  0x1c   : > { %v1016_v17 = vpack.i.bf16 %v300_v8, %v296_v7  ;;  %v1006_v18 = vpack.i.bf16 %v264_v10, %v260_v9  ;;  %v1287_v20 = vrot.slane %v365_v12, %v1261_v2  ;;  %v1290_v21 = vrot.slane %v365_v12, %v1263_v3  ;;  %v364_v28 = vld [vmem:[%s1268_s28 + $0x1] sm:$0x11]  ;;  %v565_v44 = vld [vmem:[%s1268_s28 + $0x2] sm:$0x11]  ;;  %v566_v47 = vld [vmem:[%s1268_s28 + $0x3] sm:$0x11] }
  0x1d   : > { %v1284_v19 = vsel %vm237_vm0, %v260_v9, %v271_v15  ;;  %v1021_v22 = vpack.i.bf16 %v317_v14, %v313_v13  ;;  %v1011_v23 = vpack.i.bf16 %v275_v16, %v271_v15  ;;  %v473_v29 = vrot.slane %v465_v24, %v1261_v2  ;;  %v1340_v54 = vld [vmem:[%s1268_s28 + $0x2] sm:$0x11]  ;;  %v1346_v56 = vld [vmem:[%s1268_s28 + $0x3] sm:$0x11]  ;;  %v171_v62 = vld [vmem:[%s1268_s28] sm:$0x11] }
  0x1e   : > { %1017 = vrot.lane.b32.xlu1 %v1016_v17, %s1177_s29  ;;  %1007 = vrot.lane.b32.xlu0 %v1006_v18, %s1178_s30  ;;  %v1031_v27 = vpack.i.bf16 %v1290_v21, %v1287_v20  ;;  %v477_v30 = vrot.slane %v465_v24, %v1263_v3  ;;  %v484_v31 = vrot.slane %v466_v25, %v1261_v2  ;;  %v169_v63 = vld [vmem:[%s1268_s28] sm:$0x1]  ;;  %v886_v0 = vld [vmem:[%s1268_s28 + $0x1] ss:$0 sm:$0xff] }
  0x1f   : > { %v488_v33 = vrot.slane %v466_v25, %v1263_v3  ;;  %v1306_v34 = vsel %vm237_vm0, %v264_v10, %v275_v16  ;;  %v371_v35 = vrot.slane %v363_v26, %v1261_v2  ;;  %v375_v36 = vrot.slane %v363_v26, %v1263_v3  ;;  %v172_v6 = vld [vmem:[%s1268_s28 + $0x1] sm:$0x11]  ;;  %v889_v10 = vld [vmem:[%s1268_s28] ss:$0 sm:$0xff] }
  0x20   : > { %v382_v37 = vrot.slane %v364_v28, %v1261_v2  ;;  %v386_v38 = vrot.slane %v364_v28, %v1263_v3  ;;  %v1313_v39 = vrot.slane %v366_v32, %v1261_v2  ;;  %v1316_v40 = vrot.slane %v366_v32, %v1263_v3 }
  0x21   : > { %v1319_v41 = vsel %vm237_vm0, %v473_v29, %v484_v31  ;;  %v1322_v42 = vsel %vm237_vm0, %v477_v30, %v488_v33  ;;  %v1036_v43 = vpack.i.bf16 %v477_v30, %v473_v29  ;;  %v576_v48 = vrot.slane %v565_v44, %v1263_v3 }
  0x22   : > { %1022 = vrot.lane.b32.xlu1 %v1021_v22, %s1177_s29  ;;  %1012 = vrot.lane.b32.xlu0 %v1011_v23, %s1178_s30  ;;  %v1326_v45 = vsel %vm237_vm0, %v371_v35, %v382_v37  ;;  %v1329_v46 = vsel %vm237_vm0, %v375_v36, %v386_v38  ;;  %v1051_v49 = vpack.i.bf16 %v488_v33, %v484_v31 }
  0x23   : > { %v1046_v50 = vpack.i.bf16 %v1316_v40, %v1313_v39  ;;  %v587_v51 = vrot.slane %v566_v47, %v1263_v3  ;;  %v572_v52 = vrot.slane %v565_v44, %v1261_v2  ;;  %v583_v53 = vrot.slane %v566_v47, %v1261_v2 }
  0x24   : > { %v527_v57 = vrot.slane %v1340_v54, %v1263_v3  ;;  %v523_v59 = vrot.slane %v1340_v54, %v1261_v2  ;;  %v538_v60 = vrot.slane %v1346_v56, %v1263_v3  ;;  %v534_v61 = vrot.slane %v1346_v56, %v1261_v2 }
  0x25   : > { %v1343_v55 = vsel %vm237_vm0, %v576_v48, %v587_v51  ;;  %v1351_v58 = vsel %vm237_vm0, %v572_v52, %v583_v53  ;;  %v185_v1 = vrot.slane %v171_v62, %v1261_v2  ;;  %v189_v4 = vrot.slane %v171_v62, %v1263_v3 }
  0x26   : > { %1032 = vrot.lane.b32.xlu1 %v1031_v27, %s1179_s4  ;;  %1027 = vrot.lane.b32.xlu0 %v1016_v17, %s1180_s5  ;;  %v1368_v5 = vsel %vm237_vm0, %v169_v63, %v886_v0  ;;  %v201_v8 = vrot.slane %v172_v6, %v1261_v2  ;;  %v205_v9 = vrot.slane %v172_v6, %v1263_v3  ;;  %vm632_vm0 = vcmask 875520  }
  0x27   : > { %v1076_v7 = vpack.i.bf16 %v189_v4, %v185_v1 }
  0x28   : > { %v1081_v11 = vpack.i.bf16 %v205_v9, %v201_v8 }
  0x2a   : > { %1042 = vrot.lane.b32.xlu1 %v1021_v22, %s1180_s5  ;;  %1037 = vrot.lane.b32.xlu0 %v1036_v43, %s1178_s30 }
  0x2e   : > { %1052 = vrot.lane.b32.xlu1 %v1051_v49, %s1178_s30  ;;  %1047 = vrot.lane.b32.xlu0 %v1046_v50, %s1179_s4 }
  0x32   : > { %1062 = vrot.lane.b32.xlu1 %v1036_v43, %s1181_s6  ;;  %1057 = vrot.lane.b32.xlu0 %v1031_v27, %s1182_s7 }
  0x36   : > { %1072 = vrot.lane.b32.xlu1 %v1051_v49, %s1181_s6  ;;  %1067 = vrot.lane.b32.xlu0 %v1046_v50, %s1182_s7 }
  0x3a   : > { %592 = vrot.lane.b32.xlu1 %v576_v48, %s1178_s30  ;;  %590 = vrot.lane.b32.xlu0 %v572_v52, %s1178_s30 }
  0x3e   : > { %599 = vrot.lane.b32.xlu1 %v587_v51, %s1178_s30  ;;  %597 = vrot.lane.b32.xlu0 %v583_v53, %s1178_s30 }
  0x42   : > { %609 = vrot.lane.b32.xlu0 %v889_v10, %s1183_s8  ;;  %1077 = vrot.lane.b32.xlu1 %v1076_v7, %s1178_s30 }
  0x46   : > { %1082 = vrot.lane.b32.xlu0 %v1081_v11, %s1178_s30  ;;  %1087 = vrot.lane.b32.xlu1 %v1076_v7, %s1181_s6 }
  0x4a   : > { %1092 = vrot.lane.b32.xlu0 %v1081_v11, %s1181_s6  ;;  %s1117_s6 = sshll.u32 %s1188_s16, 4  ;;  %s1118_s6 = int_to_ptr.vmem [resolvable:$false] %s1117_s6 }
  0x4b   : > { %s1119_s7 = scalar_lea.vmem %s1118_s6, 512 }
  0x90   : > { %v1018_v12 = vpop.permute.xlu1 %1017  ;;  %v1008_v13 = vpop.permute.xlu0 %1007 }
  0x91   : > { %v1010_v14 = vunpack.i.h.bf16 %v1008_v13  ;;  %v1009_v15 = vunpack.i.l.bf16 %v1008_v13  ;;  %v1020_v17 = vunpack.i.h.bf16 %v1018_v12  ;;  %v1019_v18 = vunpack.i.l.bf16 %v1018_v12 }
  0x93   : > { %v282_v16 = vsel %vm194_vm1, %v1009_v15, %v1010_v14  ;;  %v343_v26 = vsel %vm239_vm2, %v1306_v34, %v1010_v14  ;;  %v306_v32 = vsel %vm305_vm4, %v1019_v18, %v1020_v17 }
  0x94   : > { %v1023_v22 = vpop.permute.xlu1 %1022  ;;  %v1013_v23 = vpop.permute.xlu0 %1012  ;;  %v342_v27 = vsel %vm239_vm2, %v1284_v19, %v282_v16 }
  0x95   : > { %v1015_v24 = vunpack.i.h.bf16 %v1013_v23  ;;  %v1014_v25 = vunpack.i.l.bf16 %v1013_v23  ;;  %v1025_v28 = vunpack.i.h.bf16 %v1023_v22  ;;  %v1024_v29 = vunpack.i.l.bf16 %v1023_v22 }
  0x97   : > { %v289_v30 = vsel %vm194_vm1, %v1014_v25, %v1015_v24  ;;  %v345_v31 = vsel %vm241_vm3, %v343_v26, %v1015_v24  ;;  %v322_v43 = vsel %vm305_vm4, %v1024_v29, %v1025_v28 }
  0x98   : > { %v344_v33 = vsel %vm241_vm3, %v342_v27, %v289_v30  ;;  %v347_v35 = vsel %vm243_vm5, %v345_v31, %v1020_v17  ;;  %v1033_v36 = vpop.permute.xlu1 %1032  ;;  %v1028_v37 = vpop.permute.xlu0 %1027 }
  0x99   : > { %v346_v34 = vsel %vm243_vm5, %v344_v33, %v306_v32  ;;  %v1030_v38 = vunpack.i.h.bf16 %v1028_v37  ;;  %v1029_v19 = vunpack.i.l.bf16 %v1028_v37  ;;  %v349_v44 = vsel %vm245_vm6, %v347_v35, %v1025_v28 }
  0x9a   : > { %v348_v50 = vsel %vm245_vm6, %v346_v34, %v322_v43  ;;  %v1035_v53 = vunpack.i.h.bf16 %v1033_v36  ;;  %v1034_v63 = vunpack.i.l.bf16 %v1033_v36 }
  0x9b   : > { %v330_v47 = vsel %vm329_vm7, %v1029_v19, %v1030_v38  ;;  %v351_v62 = vsel %vm247_vm8, %v349_v44, %v1030_v38 }
  0x9c   : > { %v1043_v48 = vpop.permute.xlu1 %1042  ;;  %v1038_v49 = vpop.permute.xlu0 %1037  ;;  %v350_v1 = vsel %vm247_vm8, %v348_v50, %v330_v47  ;;  %v403_v16 = vsel %vm402_vm10, %v1034_v63, %v1035_v53  ;;  %v443_v29 = vsel %vm239_vm2, %v1326_v45, %v1034_v63 }
  0x9d   : > { %v1045_v51 = vunpack.i.h.bf16 %v1043_v48  ;;  %v1044_v52 = vunpack.i.l.bf16 %v1043_v48  ;;  %v1040_v6 = vunpack.i.h.bf16 %v1038_v49  ;;  %v1039_v7 = vunpack.i.l.bf16 %v1038_v49 }
  0x9e   : > { %v444_v30 = vsel %vm239_vm2, %v1329_v46, %v403_v16 }
  0x9f   : > { %v337_v0 = vsel %vm329_vm7, %v1044_v52, %v1045_v51  ;;  %v353_v4 = vsel %vm249_vm9, %v351_v62, %v1045_v51  ;;  %v495_v17 = vsel %vm194_vm1, %v1039_v7, %v1040_v6  ;;  %v544_v31 = vsel %vm239_vm2, %v1322_v42, %v1040_v6 }
  0xa0   : > { %v1053_v8 = vpop.permute.xlu1 %1052  ;;  %v1048_v9 = vpop.permute.xlu0 %1047  ;;  %v352_v10 = vsel %vm249_vm9, %v350_v1, %v337_v0  ;;  %v543_v32 = vsel %vm239_vm2, %v1319_v41, %v495_v17 }
  0xa1   : > { %v1055_v11 = vunpack.i.h.bf16 %v1053_v8  ;;  %v1054_v12 = vunpack.i.l.bf16 %v1053_v8  ;;  %v1050_v13 = vunpack.i.h.bf16 %v1048_v9  ;;  %v1049_v14 = vunpack.i.l.bf16 %v1048_v9 }
  0xa2   : > { %v1096_v15 = vpack.i.bf16 %v353_v4, %v352_v10 }
  0xa3   : > { %v502_v18 = vsel %vm194_vm1, %v1054_v12, %v1055_v11  ;;  %v419_v22 = vsel %vm402_vm10, %v1049_v14, %v1050_v13  ;;  %v546_v37 = vsel %vm241_vm3, %v544_v31, %v1055_v11  ;;  %v445_v34 = vsel %vm241_vm3, %v443_v29, %v1049_v14 }
  0xa4   : > { %1097 = vrot.lane.b32.xlu1 %v1096_v15, %s1178_s30  ;;  %v1063_v23 = vpop.permute.xlu1 %1062  ;;  %v1058_v24 = vpop.permute.xlu0 %1057  ;;  %v545_v36 = vsel %vm241_vm3, %v543_v32, %v502_v18  ;;  %v446_v45 = vsel %vm241_vm3, %v444_v30, %v419_v22  ;;  %v1186_v18 = vmov 0   ;;  %s1524_s30 = scalar_lea.hbm %s1570_s3, %s904_s27 }
  0xa5   : > { %v1065_v25 = vunpack.i.h.bf16 %v1063_v23  ;;  %v1064_v26 = vunpack.i.l.bf16 %v1063_v23  ;;  %v1060_v27 = vunpack.i.h.bf16 %v1058_v24  ;;  %v1059_v28 = vunpack.i.l.bf16 %v1058_v24  ;;  %1112 = vset.pattern.permute.xlu1 %v1186_v18  ;;  %1111 = vset.pattern.permute.xlu0 %v1186_v18 }
  0xa7   : > { %v509_v33 = vsel %vm216_vm11, %v1064_v26, %v1065_v25  ;;  %v427_v35 = vsel %vm426_vm12, %v1059_v28, %v1060_v27  ;;  %v548_v47 = vsel %vm243_vm5, %v546_v37, %v1065_v25  ;;  %v447_v48 = vsel %vm243_vm5, %v445_v34, %v1059_v28  ;;  %v785_v37 = vld [vmem:[%s1569_s2] sm:$0xff] }
  0xa8   : > { %v1073_v38 = vpop.permute.xlu1 %1072  ;;  %v1068_v46 = vpop.permute.xlu0 %1067  ;;  %v547_v41 = vsel %vm243_vm5, %v545_v36, %v509_v33  ;;  %v448_v49 = vsel %vm243_vm5, %v446_v45, %v427_v35  ;;  %v786_v36 = vld [vmem:[%s1569_s2 + $0x8] sm:$0xff] }
  0xa9   : > { %v1075_v19 = vunpack.i.h.bf16 %v1073_v38  ;;  %v1074_v43 = vunpack.i.l.bf16 %v1073_v38  ;;  %v1070_v42 = vunpack.i.h.bf16 %v1068_v46  ;;  %v1069_v44 = vunpack.i.l.bf16 %v1068_v46 }
  0xab   : > { %v516_v50 = vsel %vm216_vm11, %v1074_v43, %v1075_v19  ;;  %v550_v51 = vsel %vm245_vm6, %v548_v47, %v1075_v19  ;;  %v434_v52 = vsel %vm426_vm12, %v1069_v44, %v1070_v42  ;;  %v449_v53 = vsel %vm245_vm6, %v447_v48, %v1069_v44  ;;  %v887_v42 = vld [vmem:[%s1268_s28 + $0x2] ss:$0 sm:$0xff] }
  0xac   : > { %v549_v62 = vsel %vm245_vm6, %v547_v41, %v516_v50  ;;  %v450_v63 = vsel %vm245_vm6, %v448_v49, %v434_v52  ;;  %v593_v0 = vpop.permute.xlu1 %592  ;;  %v591_v1 = vpop.permute.xlu0 %590  ;;  %v451_v4 = vsel %vm247_vm8, %v449_v53, %v1287_v20  ;;  %v552_v6 = vsel %vm247_vm8, %v550_v51, %v527_v57  ;;  %v888_v41 = vld [vmem:[%s1268_s28 + $0x3] ss:$0 sm:$0xff] }
  0xad   : > { %v452_v7 = vsel %vm247_vm8, %v450_v63, %v1290_v21  ;;  %v453_v8 = vsel %vm249_vm9, %v451_v4, %v1313_v39  ;;  %v551_v10 = vsel %vm247_vm8, %v549_v62, %v523_v59  ;;  %v554_v20 = vsel %vm249_vm9, %v552_v6, %v538_v60  ;;  %v636_v39 = vld [vmem:[%s1568_s1] sm:$0xff] }
  0xae   : > { %v454_v9 = vsel %vm249_vm9, %v452_v7, %v1316_v40  ;;  %v553_v21 = vsel %vm249_vm9, %v551_v10, %v534_v61  ;;  %v640_v40 = vld [vmem:[%s1568_s1 + $0x20] sm:$0xff]  ;;  %v594_v54 = vsel %vm194_vm1, %v591_v1, %v593_v0  ;;  %928 = vmatprep.mubr.msk.f32.mxu0 %vm649_vm13, %v636_v39  ;;  %v615_v2 = vsel %vm239_vm2, %v1343_v55, %v593_v0  ;;  %v637_v39 = vld [vmem:[%s1568_s1 + $0x8] sm:$0xff] }
  0xaf   : > { %v1101_v57 = vpack.i.bf16 %v454_v9, %v453_v8  ;;  %v1106_v60 = vpack.i.bf16 %v554_v20, %v553_v21  ;;  %934 = vmatprep.mubr.msk.f32.mxu1 %vm649_vm13, %v640_v40  ;;  %v614_v61 = vsel %vm239_vm2, %v1351_v58, %v594_v54  ;;  %v641_v40 = vld [vmem:[%s1568_s1 + $0x28] sm:$0xff]  ;;  %v638_v54 = vld [vmem:[%s1568_s1 + $0x10] sm:$0xff] }
  0xb0   : > { %v600_v3 = vpop.permute.xlu1 %599  ;;  %v598_v59 = vpop.permute.xlu0 %597 }
  0xb1   : > { %v601_v56 = vsel %vm194_vm1, %v598_v59, %v600_v3  ;;  %1102 = vrot.lane.b32.xlu0 %v1101_v57, %s1184_s19  ;;  %1107 = vrot.lane.b32.xlu1 %v1106_v60, %s1185_s20  ;;  %v617_v11 = vsel %vm241_vm3, %v615_v2, %v600_v3  ;;  %v642_v3 = vld [vmem:[%s1568_s1 + $0x30] sm:$0xff]  ;;  %v639_v59 = vld [vmem:[%s1568_s1 + $0x18] sm:$0xff]  ;;  %s161_s20 = sand.u32 1, %s1167_s13  }
  0xb2   : > { %v616_v12 = vsel %vm241_vm3, %v614_v61, %v601_v56  ;;  %v643_v60 = vld [vmem:[%s1568_s1 + $0x38] sm:$0xff]  ;;  %s1526_s4 = scalar_lea.sflag [#allocation4], %s161_s20 }
  0xb4   : > { %v610_v13 = vpop.permute.xlu0 %609  ;;  %v1078_v14 = vpop.permute.xlu1 %1077 }
  0xb5   : > { %v618_v15 = vsel %vm243_vm5, %v616_v12, %v610_v13  ;;  %v619_v16 = vsel %vm243_vm5, %v617_v11, %v610_v13  ;;  %v1080_v55 = vunpack.i.h.bf16 %v1078_v14  ;;  %v1079_v17 = vunpack.i.l.bf16 %v1078_v14 }
  0xb6   : > { %v620_v22 = vsel %vm245_vm6, %v618_v15, %v610_v13  ;;  %v621_v23 = vsel %vm245_vm6, %v619_v16, %v610_v13 }
  0xb7   : > { %v622_v58 = vsel %vm247_vm8, %v620_v22, %v610_v13  ;;  %v623_v24 = vsel %vm247_vm8, %v621_v23, %v610_v13  ;;  %v195_v25 = vsel %vm194_vm1, %v1079_v17, %v1080_v55 }
  0xb8   : > { %v624_v26 = vsel %vm249_vm9, %v622_v58, %v610_v13  ;;  %v625_v27 = vsel %vm249_vm9, %v623_v24, %v610_v13  ;;  %v240_v28 = vsel %vm239_vm2, %v1368_v5, %v195_v25  ;;  %v1083_v29 = vpop.permute.xlu0 %1082  ;;  %v1088_v30 = vpop.permute.xlu1 %1087 }
  0xb9   : > { %628 = vrot.lane.b32.xlu0 %v624_v26, %s1187_s24  ;;  %630 = vrot.lane.b32.xlu1 %v625_v27, %s1187_s24  ;;  %v1085_v31 = vunpack.i.h.bf16 %v1083_v29  ;;  %v1084_v32 = vunpack.i.l.bf16 %v1083_v29  ;;  %v1090_v33 = vunpack.i.h.bf16 %v1088_v30  ;;  %v1089_v35 = vunpack.i.l.bf16 %v1088_v30  ;;  %s883_s24 = sshll.u32 %s161_s20, 4 }
  0xba   : > { %s163_s25 = scalar_lea.vmem [#allocation3], %s883_s24 }
  0xbb   : > { %v210_v5 = vsel %vm194_vm1, %v1084_v32, %v1085_v31  ;;  %v217_v34 = vsel %vm216_vm11, %v1089_v35, %v1090_v33  ;;  %s817_s26 = sshll.u32 %s163_s25, 4  ;;  %s1519_s26 = int_to_ptr.vmem [resolvable:$true] %s817_s26 }
  0xbc   : > { %v242_v45 = vsel %vm241_vm3, %v240_v28, %v210_v5  ;;  %v1093_v38 = vpop.permute.xlu0 %1092  ;;  %s1113_s5 = scalar_lea.vmem %s1519_s26, 256  ;;  %p1120_p0 = scmp.lt.s32.totalorder %s1519_s26, %s1118_s6 }
  0xbd   : > { %v244_v46 = vsel %vm243_vm5, %v242_v45, %v217_v34  ;;  %v1095_v19 = vunpack.i.h.bf16 %v1093_v38  ;;  %v1094_v43 = vunpack.i.l.bf16 %v1093_v38  ;;  %794 = vperm.xlu1 %1112, %v786_v36   ;;  %789 = vperm.xlu0 %1111, %v785_v37   ;;  %p1114_p11 = scmp.ne.s32.totalorder %s1519_s26, %s1113_s5  ;;  %p1121_p1 = scmp.lt.s32.totalorder %s1119_s7, %s1113_s5 }
  0xbf   : > { %v223_v44 = vsel %vm216_vm11, %v1094_v43, %v1095_v19  ;;  %p1115_p12 = pnand %p1114_p11, %p1249_p5  ;;  %p1122_p2 = por %p1121_p1, %p1120_p0 }
  0xc0   : > { %v246_v47 = vsel %vm245_vm6, %v244_v46, %v223_v44 }
  0xc1   : > { %v248_v48 = vsel %vm247_vm8, %v246_v47, %v887_v42  ;;  %p1116_p13 = pneg %p1115_p12 }
  0xc2   : > { %v250_v49 = vsel %vm249_vm9, %v248_v48, %v888_v41 }
  0xc3   : > { %p1123_p3 = pnand %p1122_p2, %p1116_p13 }
 0x116   : > { %v1098_v50 = vpop.permute.xlu1 %1097 }
 0x117   : > { %v1100_v51 = vunpack.i.h.bf16 %v1098_v50  ;;  %v1099_v52 = vunpack.i.l.bf16 %v1098_v50 }
 0x119   : > { %v360_v53 = vsel %vm194_vm1, %v1099_v52, %v1100_v51 }
 0x11a   : > { %v940_v62 = vpack.c.bf16 %v360_v53, %v250_v49 }
 0x11c   : > { %941 = vmatprep.subr.bf16.mxu0 %v940_v62  ;;  %948 = vmatprep.subr.bf16.mxu1 %v940_v62 }
 0x11d   : > { %943 = vmatpush3.bf16.msra.mxu0 %v940_v62  ;;  %951 = vmatpush3.bf16.msra.mxu1 %v940_v62 }
 0x123   : > { %v1103_v63 = vpop.permute.xlu0 %1102  ;;  %v1108_v4 = vpop.permute.xlu1 %1107 }
 0x124   : > { %v1105_v0 = vunpack.i.h.bf16 %v1103_v63  ;;  %v1104_v1 = vunpack.i.l.bf16 %v1103_v63  ;;  %v1110_v6 = vunpack.i.h.bf16 %v1108_v4  ;;  %v1109_v7 = vunpack.i.l.bf16 %v1108_v4 }
 0x126   : > { %v462_v8 = vsel %vm461_vm14, %v1104_v1, %v1105_v0  ;;  %v562_v9 = vsel %vm561_vm15, %v1109_v7, %v1110_v6 }
 0x127   : > { %v944_v10 = vpack.c.bf16 %v562_v9, %v462_v8 }
 0x129   : > { %945 = vmatprep.subr.bf16.mxu0 %v944_v10  ;;  %949 = vmatprep.subr.bf16.mxu1 %v944_v10 }
 0x12a   : > { %947 = vmatpush3.bf16.msra.mxu0 %v944_v10  ;;  %952 = vmatpush3.bf16.msra.mxu1 %v944_v10 }
 0x12b   : > { %v629_v20 = vpop.permute.xlu0 %628  ;;  %v631_v57 = vpop.permute.xlu1 %630 }
 0x12c   : > { %v633_v21 = vsel %vm632_vm0, %v629_v20, %v631_v57 }
 0x12d   : > { %926 = vmatprep.subr.mxu0 %v633_v21  ;;  %950 = vmatprep.subr.mxu1 %v633_v21 }
 0x12e   : > { %927 = vmatpush3.msra.mxu0 %v633_v21  ;;  %953 = vmatpush3.msra.mxu1 %v633_v21 }
 0x12f   : > { %929 = vmatmul.mubr.msk.f32.vlgmr.msra.gmra.mrb[0].mxu0 %vm649_vm13, %v637_v39  ;;  %935 = vmatmul.mubr.msk.f32.vlgmr.msra.gmra.mrb[0].mxu1 %vm649_vm13, %v641_v40 }
 0x130   : > { %931 = vmatprep.mubr.msk.f32.mxu0 %vm649_vm13, %v638_v54  ;;  %937 = vmatprep.mubr.msk.f32.mxu1 %vm649_vm13, %v642_v3 }
 0x133   : > { %932 = vmatmul.mubr.msk.f32.gmra.mrb[2].mxu0 %vm649_vm13, %v639_v59  ;;  %938 = vmatmul.mubr.msk.f32.gmra.mrb[2].mxu1 %vm649_vm13, %v643_v60 }
 0x13c   : > { %v795_v22 = vpop.permute.xlu1 %794  ;;  %v790_v58 = vpop.permute.xlu0 %789 }
 0x202   : > { %v930_v2 = vpop.f32.mrb[0].mxu0  ;;  %v936_v56 = vpop.f32.mrb[0].mxu1 }
 0x203   : > { %v740_v61 = vpop.f32.mrb[1].mxu0  ;;  %v760_v11 = vpop.f32.mrb[1].mxu1 }
 0x206   : > { %v933_v12 = vpop.f32.mrb[2].mxu0  ;;  %v939_v13 = vpop.f32.mrb[2].mxu1 }
 0x207   : > { %v780_v14 = vmax.f32 %v930_v2, %v933_v12  ;;  %v782_v15 = vmax.f32 %v936_v56, %v939_v13  ;;  %v750_v16 = vpop.f32.mrb[3].mxu0  ;;  %v770_v55 = vpop.f32.mrb[3].mxu1 }
 0x208   : > { %v779_v17 = vmax.f32 %v740_v61, %v750_v16  ;;  %v781_v18 = vmax.f32 %v760_v11, %v770_v55 }
 0x209   : > { %v784_v23 = vmax.f32 %v780_v14, %v782_v15 }
 0x20a   : > { %v783_v24 = vmax.f32 %v779_v17, %v781_v18 }
 0x20b   : > { %v798_v25 = vadd.f32 %v795_v22, %v784_v23 }
 0x20c   : > { %v797_v26 = vadd.f32 %v790_v58, %v783_v24 }
 0x20d   : > { %v800_v27 = vmax.f32 %v798_v25, 0.0 }
 0x20e   : > { %v799_v28 = vmax.f32 %v797_v26, 0.0 }
 0x20f   : > { %802 = vst [vmem:[%s163_s25 + $0x8] sm:$0xff] %v800_v27 }
 0x210   : > { %801 = vst [vmem:[%s163_s25] sm:$0xff] %v799_v28 }
 0x211   : > { %1126 = shalt.err (!%p1123_p3)
}
 0x212   : > { %s1127_s8 = scalar_lea.hbm %s1524_s30, 256  ;;  %s1131_s11 = scalar_lea.hbm %s1570_s3, 512 }
 0x213   : > { %p1128_p4 = scmp.ne.s32.totalorder %s1524_s30, %s1127_s8  ;;  %p1132_p9 = scmp.lt.u32.totalorder %s1524_s30, %s1570_s3 }
 0x214   : > { %p1133_p10 = scmp.lt.u32.totalorder %s1131_s11, %s1127_s8  ;;  %p1135_p12 = scmp.lt.u32.totalorder %s1127_s8, %s1524_s30 }
 0x215   : > { %p1129_p7 = pnand %p1128_p4, %p1249_p5 }
 0x216   : > { %p1134_p11 = por %p1133_p10, %p1132_p9 }
 0x217   : > { %p1130_p8 = pneg %p1129_p7 }
 0x218   : > { %p1136_p13 = por %p1135_p12, %p1134_p11 }
 0x21a   : > { %p1137_p0 = pnand %p1136_p13, %p1130_p8 }
 0x21c   : > { %1140 = shalt.err (!%p1137_p0)
}
 0x21d   : > { %s1189_s20 = smov 128   ;;  %s1190_s24 = smov 8  }
 0x21e   : > { %954 = dma.vmem_to_hbm [thread:$0]  (%p1249_p5), %s1519_s26, 256, %s1524_s30, %s1526_s4, %s1189_s20, %s1189_s20, %s1190_s24  }
 0x21f PF: > { %p960_p1 = scmp.ge.s32.totalorder %s1175_s15, 2  ;;  %s832_s25 = sand.u32 1, %s1163_s12  }
 0x220   : > { %s833_s27 = scalar_lea.sflag [#allocation4], %s832_s25 }
 0x221   : > { %p957_p2 = pnand %p960_p1, %p1253_p6 }
 0x223   : > { %1158 = dma.done.wait (!%p957_p2), %s833_s27, 256  }
 0x224   : > { %1160 = vsyncadd (!%p957_p2), %s833_s27, 4294967040  ;;  %p13_p3 = scmp.ge.s32.totalorder %s1236_s18, 4   ;;  %s1573_s12 = smov %s1167_s13 }
 0x225   : > { %s1574_s13 = smov %s1171_s14  ;;  %s1575_s14 = smov %s1247_s21 }
 0x226   : > { %s1576_s15 = smov %s1236_s18  ;;  %15 = sbr.rel (!%p13_p3) target bundleno = 3 (0x3), region = 67 }
 0x22d   :  { %838 = vsyncpa [#allocation4], 1 }
 0x22e   :  { %840 = vsyncpa [#allocation4 + $0x1], 1 }

</bundles_post_ra>
